<compile_context>
chip_gen: v7x
topology: tpu7x:2x2x1
jax: 0.10.0
libtpu: 0.0.40
codegen_flags: <defaults>
</compile_context>

<pallas_src>
import math
import functools

import jax
import jax.numpy as jnp
from jax.experimental import pallas as pl
from jax.experimental.pallas import tpu as pltpu

LANE = 128  # TPU lane width


def _round_up(x, m):
    return (x + m - 1) // m * m


def _tpu_vmem_capacity_bytes():
    try:
        return int(pltpu.get_tpu_info().vmem_capacity_bytes)
    except Exception:
        return 128 * 1024 * 1024


def _mxu_is_256_wide():
    """True on generations with a 256-wide MXU (v6e / v7x)."""
    try:
        kind = jax.devices()[0].device_kind.lower()
    except Exception:
        return False
    return ("v6" in kind) or ("v7" in kind) or ("7x" in kind)


# ---------------------------------------------------------------------------
# Kernel bodies
# ---------------------------------------------------------------------------

def _accumulate_taps(x_rows_ref, w_ref, b_ref, o_ref, acc_ref, *, offsets,
                     m_rows, precision):
    """Shared tap loop.

    x_rows_ref: (rows, K)   flat (row-major over (H, Wp)) input slab
    w_ref:      (n_taps, K, TCO)
    b_ref:      (1, TCO) f32
    o_ref:      (m_rows, TCO)   lane-dense output slab
    acc_ref:    (m_rows, TCO) f32 VMEM scratch

    Each tap is one MXU matmul whose LHS is a *contiguous* row window of the
    flat slab (pure sublane-offset slice, no materialized patch copy).  acc is
    initialized from the first tap (+ bias) and the last tap is fused into the
    output store, so there is no zero-init / extra copy pass.
    """
    n_taps = len(offsets)
    for t, off in enumerate(offsets):
        lhs = x_rows_ref[pl.ds(off, m_rows), :]
        p = jnp.dot(lhs, w_ref[t], preferred_element_type=jnp.float32,
                    precision=precision)
        if t == 0:
            p = p + b_ref[...]
            if n_taps == 1:
                o_ref[...] = p.astype(o_ref.dtype)
                return
            acc_ref[...] = p
        elif t == n_taps - 1:
            o_ref[...] = (acc_ref[...] + p).astype(o_ref.dtype)
        else:
            acc_ref[...] += p


def _conv_kernel_whole_image(x_ref, w_ref, b_ref, o_ref, acc_ref, *, offsets,
                             m_rows, precision):
    """Path 1: whole (flat) image per grid step.  grid = (Cout tiles, N)."""
    _accumulate_taps(x_ref, w_ref, b_ref, o_ref, acc_ref, offsets=offsets,
                     m_rows=m_rows, precision=precision)


def _conv_kernel_row_tiled(x_hbm_ref, w_ref, b_ref, o_ref, xbuf_ref, acc_ref, *,
                           offsets, m_rows, rows_in, rows_per_image, precision):
    """Path 2: Ho-tiled with a halo'd manual DMA (bounds VMEM; for v7x /
    large images).  grid = (Cout tiles, N, row tiles)."""
    n = pl.program_id(1)
    t = pl.program_id(2)
    row0 = n * rows_per_image + t * m_rows
    # Halo'd input row window for this output tile, copied HBM -> VMEM.
    # TODO(synk): double-buffer this copy (prefetch tile t+1) so the DMA
    # overlaps the MXU work; single-buffered already bounds VMEM.
    pltpu.sync_copy(x_hbm_ref.at[pl.ds(row0, rows_in)], xbuf_ref)
    _accumulate_taps(xbuf_ref, w_ref, b_ref, o_ref, acc_ref, offsets=offsets,
                     m_rows=m_rows, precision=precision)


# ---------------------------------------------------------------------------
# Wrapper
# ---------------------------------------------------------------------------

def ff_gauss_conv2d(x_nchw, W_oihw, bias=None, *, stride=(1, 1), padding=(0, 0),
                    dilation=(1, 1), compute_dtype=jnp.bfloat16, out_dtype=None,
                    cout_tile=None, row_tile=None, fold_kw=None, precision=None):
    """Conv2d forward (groups=1) with the hot loop in a Pallas TPU kernel.

    compute_dtype: matmul operand dtype (bf16 default; accumulation is f32).
                   For a true-f32 path pass compute_dtype=jnp.float32 and
                   precision=jax.lax.Precision.HIGHEST.
    row_tile:      output rows per grid step (None = auto; whole image when it
                   fits VMEM, halo'd row tiles otherwise).
    fold_kw:       fold the KW taps into the matmul K dim (None = auto, used
                   when Cin*KW <= 128 -- the small-Cin / first-layer case).
    """
    N, Cin, H, W = x_nchw.shape
    Cout, Cin_w, KH, KW = W_oihw.shape
    assert Cin_w == Cin  # TODO(synk): grouped conv (groups > 1) not implemented.
    sh, sw = stride
    ph, pw = padding
    dh, dw = dilation

    if out_dtype is None:
        out_dtype = x_nchw.dtype

    Hp, Wp = H + 2 * ph, W + 2 * pw
    # Dense (stride-1) output extents; strided outputs are a subsample.
    Ho1 = Hp - dh * (KH - 1)
    Wo1 = Wp - dw * (KW - 1)
    assert Ho1 >= 1 and Wo1 >= 1
    # TODO(synk): stride > 1 computes the dense output and subsamples in the
    # wrapper (sh*sw x extra MXU work); add a strided-pl.ds kernel variant if
    # strided convs become hot.

    if fold_kw is None:
        fold_kw = (Cin * KW <= LANE) and KW > 1

    # ---- glue: layout transforms (data movement only) ----------------------
    x_nhwc = jnp.transpose(x_nchw, (0, 2, 3, 1))
    w_hwio = jnp.transpose(W_oihw, (2, 3, 1, 0))          # (KH, KW, Cin, Cout)

    if fold_kw:
        # Fold KW*Cin into K: x_aug[h, w, kw*Cin + c] = x_pad[h, w + kw*dw, c]
        K = KW * Cin
        n_taps = KH
        offsets = [kh * dh * Wp for kh in range(KH)]
        xw = jnp.pad(x_nhwc, ((0, 0), (ph, ph), (pw, pw + (KW - 1) * dw), (0, 0)))
        x_sp = jnp.concatenate(
            [xw[:, :, kw * dw:kw * dw + Wp, :] for kw in range(KW)], axis=-1)
        w_taps = w_hwio.reshape(KH, KW * Cin, Cout)
    else:
        K = Cin
        n_taps = KH * KW
        offsets = [kh * dh * Wp + kw * dw for kh in range(KH) for kw in range(KW)]
        x_sp = jnp.pad(x_nhwc, ((0, 0), (ph, ph), (pw, pw), (0, 0)))
        w_taps = w_hwio.reshape(KH * KW, Cin, Cout)

    # Pad K only to the 8-sublane granule (NOT to 128): HBM/DMA traffic stays
    # ~Cin-proportional; the DMA relayout handles lane padding in VMEM.
    K_pad = _round_up(K, 8)
    CoutP = _round_up(Cout, LANE)

    x_sp = jnp.pad(x_sp, ((0, 0), (0, 0), (0, 0), (0, K_pad - K)))
    x_flat = x_sp.reshape(N, Hp * Wp, K_pad).astype(compute_dtype)
    w_taps = jnp.pad(w_taps, ((0, 0), (0, K_pad - K), (0, CoutP - Cout)))
    w_taps = w_taps.astype(compute_dtype)

    b = bias if bias is not None else jnp.zeros((Cout,), jnp.float32)
    b2d = jnp.pad(b.astype(jnp.float32), (0, CoutP - Cout)).reshape(1, CoutP)

    # ---- tiling choices -----------------------------------------------------
    if cout_tile is None:
        cout_tile = 256 if _mxu_is_256_wide() else 128   # 256-wide MXU on v6e/v7x
    TCO = cout_tile if CoutP % cout_tile == 0 else LANE
    TCO = min(TCO, CoutP)
    nC = CoutP // TCO

    row_align = 8 // math.gcd(Wp, 8)   # output-row granule so rows*Wp % 8 == 0
    max_off = max(offsets)

    itm = jnp.dtype(compute_dtype).itemsize
    oitm = jnp.dtype(out_dtype).itemsize
    laneK = _round_up(K_pad, LANE)     # VMEM lane footprint of the K dim
    vmem_cap = min(100 * 2**20, int(0.75 * _tpu_vmem_capacity_bytes()))

    # Auto row tiling: bound the per-step x slab so large images fit v7x VMEM.
    x_whole_bytes = 2 * _round_up(Hp * Wp + max_off, 8) * laneK * itm
    if row_tile is None and x_whole_bytes > vmem_cap // 3:
        target = max(vmem_cap // 8, 2 * 2**20)
        th = max(1, target // (Wp * laneK * itm))
        row_tile = max(row_align, (th // row_align) * row_align)

    if row_tile is None:
        # ---- Path 1: whole (flat) image per grid step ----------------------
        Hrows = _round_up(Ho1, row_align)
        M = Hrows * Wp
        XLENP = _round_up(max_off + M, 8)
        x_flat = jnp.pad(x_flat, ((0, 0), (0, XLENP - Hp * Wp), (0, 0)))

        kernel = functools.partial(_conv_kernel_whole_image,
                                   offsets=tuple(offsets), m_rows=M,
                                   precision=precision)
        est = (2 * XLENP * laneK * itm + 2 * n_taps * K_pad * TCO * itm
               + 2 * M * TCO * oitm + M * TCO * 4 + 2 * TCO * 4)
        vmem_limit = int(min(max(int(1.5 * est), 32 * 2**20), vmem_cap))

        out_flat = pl.pallas_call(
            kernel,
            out_shape=jax.ShapeDtypeStruct((N, M, CoutP), out_dtype),
            grid=(nC, N),  # c outermost: weight/bias blocks DMA'd once per c
            in_specs=[
                pl.BlockSpec((None, XLENP, K_pad), lambda c, n: (n, 0, 0)),
                pl.BlockSpec((n_taps, K_pad, TCO), lambda c, n: (0, 0, c)),
                pl.BlockSpec((1, TCO), lambda c, n: (0, c)),
            ],
            out_specs=pl.BlockSpec((None, M, TCO), lambda c, n: (n, 0, c)),
            scratch_shapes=[pltpu.VMEM((M, TCO), jnp.float32)],
            compiler_params=pltpu.CompilerParams(
                dimension_semantics=("parallel", "parallel"),
                vmem_limit_bytes=vmem_limit),
        )(x_flat, w_taps, b2d)
        Hrows_out = Hrows
    else:
        # ---- Path 2: Ho-tiled, halo'd manual DMA (bounds VMEM; v7x) --------
        TH = max(row_align, _round_up(int(row_tile), row_align))
        HrowsP = _round_up(Ho1, TH)
        nT = HrowsP // TH
        M = TH * Wp                       # per-tile matmul M (8-aligned)
        ROWS_IN = max_off + M             # halo'd input rows per tile
        XLENP = _round_up(HrowsP * Wp + max_off, 8)
        x_flat = jnp.pad(x_flat, ((0, 0), (0, XLENP - Hp * Wp), (0, 0)))
        x_flat2 = x_flat.reshape(N * XLENP, K_pad)

        kernel = functools.partial(_conv_kernel_row_tiled,
                                   offsets=tuple(offsets), m_rows=M,
                                   rows_in=ROWS_IN, rows_per_image=XLENP,
                                   precision=precision)
        est = (_round_up(ROWS_IN, 8) * laneK * itm
               + 2 * n_taps * K_pad * TCO * itm
               + 2 * M * TCO * oitm + M * TCO * 4 + 2 * TCO * 4)
        vmem_limit = int(min(max(int(1.5 * est), 32 * 2**20), vmem_cap))

        out_flat = pl.pallas_call(
            kernel,
            out_shape=jax.ShapeDtypeStruct((N, HrowsP * Wp, CoutP), out_dtype),
            grid=(nC, N, nT),
            in_specs=[
                pl.BlockSpec(memory_space=pl.ANY),           # x stays in HBM
                pl.BlockSpec((n_taps, K_pad, TCO), lambda c, n, t: (0, 0, c)),
                pl.BlockSpec((1, TCO), lambda c, n, t: (0, c)),
            ],
            out_specs=pl.BlockSpec((None, M, TCO), lambda c, n, t: (n, t, c)),
            scratch_shapes=[pltpu.VMEM((ROWS_IN, K_pad), compute_dtype),
                            pltpu.VMEM((M, TCO), jnp.float32)],
            compiler_params=pltpu.CompilerParams(
                dimension_semantics=("parallel", "parallel", "parallel"),
                vmem_limit_bytes=vmem_limit),
        )(x_flat2, w_taps, b2d)
        Hrows_out = HrowsP

    # ---- glue: crop the full-width slab and go back to NCHW ----------------
    out_nhwc = out_flat.reshape(N, Hrows_out, Wp, CoutP)[:, :Ho1, :Wo1, :Cout]
    if sh > 1 or sw > 1:
        out_nhwc = out_nhwc[:, ::sh, ::sw, :]
    return jnp.transpose(out_nhwc, (0, 3, 1, 2))


# ---------------------------------------------------------------------------
# Module parameter init / reparameterized sampling (JAX glue)
# ---------------------------------------------------------------------------

def init_ff_gauss_conv2d_params(key, in_channels, out_channels, kernel_size):
    """Parameter init mirroring FFGaussConv2d.reset_parameters."""
    KH, KW = kernel_size
    k_mw, k_lw, k_lb = jax.random.split(key, 3)
    fan_in = in_channels * KH * KW
    std = math.sqrt(2.0 / fan_in)  # kaiming_normal_(mode='fan_in')
    mean_w = std * jax.random.normal(
        k_mw, (out_channels, in_channels, KH, KW), jnp.float32)
    logvar_w = -9.0 + 1e-4 * jax.random.normal(
        k_lw, (out_channels, in_channels, KH, KW), jnp.float32)
    mean_bias = jnp.zeros((out_channels,), jnp.float32)
    logvar_bias = -9.0 + 1e-4 * jax.random.normal(
        k_lb, (out_channels,), jnp.float32)
    return mean_w, logvar_w, mean_bias, logvar_bias


def sample_weights(key, mean_w, logvar_w, mean_bias, logvar_bias, training):
    """sample_W / sample_b (reparameterization).  Kept in JAX glue: the weight
    blocks are revisited across grid steps, so sampling must happen exactly
    once per forward (not per grid step)."""
    if not training:
        return mean_w, mean_bias
    k_w, k_b = jax.random.split(key)
    eps_w = jax.random.normal(k_w, mean_w.shape, mean_w.dtype)
    eps_b = jax.random.normal(k_b, mean_bias.shape, mean_bias.dtype)
    W = mean_w + eps_w * jnp.exp(0.5 * logvar_w)
    b = mean_bias + eps_b * jnp.exp(0.5 * logvar_bias)
    return W, b


if __name__ == "__main__":
    key = jax.random.PRNGKey(0)
    k_x, k_param, k_samp = jax.random.split(key, 3)

    # Small shapes consistent with the module.
    N, Cin, H, W = 2, 4, 16, 16
    Cout, KH, KW = 8, 3, 3
    stride, padding, dilation = (1, 1), (1, 1), (1, 1)

    x = jax.random.normal(k_x, (N, Cin, H, W), jnp.float32)
    mean_w, logvar_w, mean_bias, logvar_bias = init_ff_gauss_conv2d_params(
        k_param, Cin, Cout, (KH, KW))

    # training=True path: sample W, b via reparameterization, conv in Pallas.
    W_samp, b_samp = sample_weights(k_samp, mean_w, logvar_w, mean_bias,
                                    logvar_bias, training=True)

    # Reference with the same sampled weights.
    y_ref = jax.lax.conv_general_dilated(
        x, W_samp, window_strides=stride,
        padding=[(padding[0], padding[0]), (padding[1], padding[1])],
        rhs_dilation=dilation,
        dimension_numbers=("NCHW", "OIHW", "NCHW"),
    ) + b_samp.reshape(1, Cout, 1, 1)

    # 1) Default path: bf16 compute + f32 accumulation, KW folded into K
    #    (small-Cin layer), whole-image blocks, (Cout-tile, N) grid.
    y1 = jax.block_until_ready(
        ff_gauss_conv2d(x, W_samp, b_samp, stride=stride, padding=padding,
                        dilation=dilation))
    assert y1.shape == (N, Cout, H, W)
    assert jnp.allclose(y1, y_ref, atol=5e-2, rtol=5e-2)

    # 2) Row-tiled path (halo'd manual DMA -- the v7x / large-image shape
    #    class), exercised here with a small explicit tile.
    y2 = jax.block_until_ready(
        ff_gauss_conv2d(x, W_samp, b_samp, stride=stride, padding=padding,
                        dilation=dilation, row_tile=8))
    assert y2.shape == (N, Cout, H, W)
    assert jnp.allclose(y2, y_ref, atol=5e-2, rtol=5e-2)

    # 3) Per-(kh,kw)-tap path (the layout mid-network layers with larger Cin
    #    use), f32 storage at default MXU precision.
    y3 = jax.block_until_ready(
        ff_gauss_conv2d(x, W_samp, b_samp, stride=stride, padding=padding,
                        dilation=dilation, compute_dtype=jnp.float32,
                        fold_kw=False))
    assert y3.shape == (N, Cout, H, W)
    assert jnp.allclose(y3, y_ref, atol=5e-2, rtol=5e-2)

    # 4) Strided conv (wrapper subsamples the dense output).
    y_ref_s2 = jax.lax.conv_general_dilated(
        x, W_samp, window_strides=(2, 2), padding=[(1, 1), (1, 1)],
        rhs_dilation=(1, 1), dimension_numbers=("NCHW", "OIHW", "NCHW"),
    ) + b_samp.reshape(1, Cout, 1, 1)
    y4 = jax.block_until_ready(
        ff_gauss_conv2d(x, W_samp, b_samp, stride=(2, 2), padding=(1, 1),
                        dilation=(1, 1)))
    assert y4.shape == y_ref_s2.shape
    assert jnp.allclose(y4, y_ref_s2, atol=5e-2, rtol=5e-2)

    print("KERNEL_OK")
</pallas_src>

<mosaic_0001>
module attributes {stable_mosaic.version = 11 : i64} {
  func.func @_conv_kernel_whole_image(%arg0: i32, %arg1: i32, %arg2: memref<1x328x16xbf16, #tpu.memory_space<vmem>>, %arg3: memref<3x16x128xbf16, #tpu.memory_space<vmem>>, %arg4: memref<1x128xf32, #tpu.memory_space<vmem>>, %arg5: memref<1x288x128xf32, #tpu.memory_space<vmem>>, %arg6: memref<288x128xf32, #tpu.memory_space<vmem>>) attributes {dimension_semantics = [#tpu.dimension_semantics<parallel>, #tpu.dimension_semantics<parallel>], iteration_bounds = array<i64: 1, 2>, scalar_prefetch = 0 : i64, scratch_operands = 1 : i64, tpu.core_type = #tpu.core_type<tc>, window_params = [{transform_indices = @transform_0, window_bounds = array<i64: 1, 328, 16>}, {transform_indices = @transform_1, window_bounds = array<i64: 3, 16, 128>}, {transform_indices = @transform_2, window_bounds = array<i64: 1, 128>}, {transform_indices = @transform_3, window_bounds = array<i64: 1, 288, 128>}]} {
    %c0 = arith.constant 0 : index
    %c0_0 = arith.constant 0 : index
    %c0_1 = arith.constant 0 : index
    %0 = vector.load %arg2[%c0, %c0_0, %c0_1] : memref<1x328x16xbf16, #tpu.memory_space<vmem>>, vector<1x288x16xbf16>
    %1 = vector.shape_cast %0 : vector<1x288x16xbf16> to vector<288x16xbf16>
    %c0_2 = arith.constant 0 : index
    %c0_3 = arith.constant 0 : index
    %c0_4 = arith.constant 0 : index
    %2 = vector.load %arg3[%c0_2, %c0_3, %c0_4] : memref<3x16x128xbf16, #tpu.memory_space<vmem>>, vector<1x16x128xbf16>
    %3 = vector.shape_cast %2 : vector<1x16x128xbf16> to vector<16x128xbf16>
    %cst = arith.constant dense<0.000000e+00> : vector<288x128xf32>
    %4 = tpu.matmul %1, %3, %cst {dimension_numbers = #tpu.dot_dimension_numbers<[1], [0], [0], [1], [0, 0, 1, 1], [], []>} : vector<288x16xbf16>, vector<16x128xbf16>, vector<288x128xf32> -> vector<288x128xf32>
    %c0_5 = arith.constant 0 : index
    %c0_6 = arith.constant 0 : index
    %5 = vector.load %arg4[%c0_5, %c0_6] : memref<1x128xf32, #tpu.memory_space<vmem>>, vector<1x128xf32>
    %6 = vector.broadcast %5 : vector<1x128xf32> to vector<288x128xf32>
    %7 = arith.addf %4, %6 : vector<288x128xf32>
    %c0_7 = arith.constant 0 : index
    %c0_8 = arith.constant 0 : index
    %8 = vector.load %arg6[%c0_7, %c0_8] : memref<288x128xf32, #tpu.memory_space<vmem>>, vector<288x128xf32>
    tpu.vector_store %arg6[%c0_7, %c0_8], %7 {strides = array<i32>} : memref<288x128xf32, #tpu.memory_space<vmem>>, vector<288x128xf32>,
    %c0_9 = arith.constant 0 : index
    %c18 = arith.constant 18 : index
    %c0_10 = arith.constant 0 : index
    %9 = vector.load %arg2[%c0_9, %c18, %c0_10] : memref<1x328x16xbf16, #tpu.memory_space<vmem>>, vector<1x288x16xbf16>
    %10 = vector.shape_cast %9 : vector<1x288x16xbf16> to vector<288x16xbf16>
    %c1 = arith.constant 1 : index
    %c0_11 = arith.constant 0 : index
    %c0_12 = arith.constant 0 : index
    %11 = vector.load %arg3[%c1, %c0_11, %c0_12] : memref<3x16x128xbf16, #tpu.memory_space<vmem>>, vector<1x16x128xbf16>
    %12 = vector.shape_cast %11 : vector<1x16x128xbf16> to vector<16x128xbf16>
    %cst_13 = arith.constant dense<0.000000e+00> : vector<288x128xf32>
    %13 = tpu.matmul %10, %12, %cst_13 {dimension_numbers = #tpu.dot_dimension_numbers<[1], [0], [0], [1], [0, 0, 1, 1], [], []>} : vector<288x16xbf16>, vector<16x128xbf16>, vector<288x128xf32> -> vector<288x128xf32>
    %c0_14 = arith.constant 0 : index
    %c0_15 = arith.constant 0 : index
    %14 = vector.load %arg6[%c0_14, %c0_15] : memref<288x128xf32, #tpu.memory_space<vmem>>, vector<288x128xf32>
    %15 = arith.addf %14, %13 : vector<288x128xf32>
    %c0_16 = arith.constant 0 : index
    %c0_17 = arith.constant 0 : index
    %16 = vector.load %arg6[%c0_16, %c0_17] : memref<288x128xf32, #tpu.memory_space<vmem>>, vector<288x128xf32>
    tpu.vector_store %arg6[%c0_16, %c0_17], %15 {strides = array<i32>} : memref<288x128xf32, #tpu.memory_space<vmem>>, vector<288x128xf32>,
    %c0_18 = arith.constant 0 : index
    %c36 = arith.constant 36 : index
    %c0_19 = arith.constant 0 : index
    %17 = vector.load %arg2[%c0_18, %c36, %c0_19] : memref<1x328x16xbf16, #tpu.memory_space<vmem>>, vector<1x288x16xbf16>
    %18 = vector.shape_cast %17 : vector<1x288x16xbf16> to vector<288x16xbf16>
    %c2 = arith.constant 2 : index
    %c0_20 = arith.constant 0 : index
    %c0_21 = arith.constant 0 : index
    %19 = vector.load %arg3[%c2, %c0_20, %c0_21] : memref<3x16x128xbf16, #tpu.memory_space<vmem>>, vector<1x16x128xbf16>
    %20 = vector.shape_cast %19 : vector<1x16x128xbf16> to vector<16x128xbf16>
    %cst_22 = arith.constant dense<0.000000e+00> : vector<288x128xf32>
    %21 = tpu.matmul %18, %20, %cst_22 {dimension_numbers = #tpu.dot_dimension_numbers<[1], [0], [0], [1], [0, 0, 1, 1], [], []>} : vector<288x16xbf16>, vector<16x128xbf16>, vector<288x128xf32> -> vector<288x128xf32>
    %c0_23 = arith.constant 0 : index
    %c0_24 = arith.constant 0 : index
    %22 = vector.load %arg6[%c0_23, %c0_24] : memref<288x128xf32, #tpu.memory_space<vmem>>, vector<288x128xf32>
    %23 = arith.addf %22, %21 : vector<288x128xf32>
    %c0_25 = arith.constant 0 : index
    %c0_26 = arith.constant 0 : index
    %c0_27 = arith.constant 0 : index
    %24 = vector.load %arg5[%c0_25, %c0_26, %c0_27] : memref<1x288x128xf32, #tpu.memory_space<vmem>>, vector<1x288x128xf32>
    %25 = vector.shape_cast %24 : vector<1x288x128xf32> to vector<288x128xf32>
    %26 = vector.shape_cast %23 : vector<288x128xf32> to vector<1x288x128xf32>
    tpu.vector_store %arg5[%c0_25, %c0_26, %c0_27], %26 {strides = array<i32>} : memref<1x288x128xf32, #tpu.memory_space<vmem>>, vector<1x288x128xf32>,
    return
  }
  func.func @transform_0(%arg0: i32, %arg1: i32) -> (i32, i32, i32) {
    %c0_i32 = arith.constant 0 : i32
    %c0_i32_0 = arith.constant 0 : i32
    %c0_i32_1 = arith.constant 0 : i32
    return %arg1, %c0_i32, %c0_i32_0 : i32, i32, i32
  }
  func.func @transform_1(%arg0: i32, %arg1: i32) -> (i32, i32, i32) {
    %c0_i32 = arith.constant 0 : i32
    %c0_i32_0 = arith.constant 0 : i32
    %c0_i32_1 = arith.constant 0 : i32
    return %c0_i32, %c0_i32_0, %arg0 : i32, i32, i32
  }
  func.func @transform_2(%arg0: i32, %arg1: i32) -> (i32, i32) {
    %c0_i32 = arith.constant 0 : i32
    %c0_i32_0 = arith.constant 0 : i32
    return %c0_i32, %arg0 : i32, i32
  }
  func.func @transform_3(%arg0: i32, %arg1: i32) -> (i32, i32, i32) {
    %c0_i32 = arith.constant 0 : i32
    %c0_i32_0 = arith.constant 0 : i32
    return %arg1, %c0_i32, %arg0 : i32, i32, i32
  }
}

</mosaic_0001>

<bundles_post_ra>
// kernel: tpu_custom_call.1
= control target key start
LH: loop header
LB: loop body
LE: loop exit
PB: predicated region body
PF: predicated region fallthrough
CT: control target
= control target key end

     0   :  { %8 = vsyncpa [#allocation4], 0  ;;  %s2799_s0 = inlined_call_operand.vmem [shape: bf16[2,328,16], index: 0, kind: input, shape index: {}]   ;;  %s2800_s1 = inlined_call_operand.vmem [shape: bf16[3,16,128], index: 1, kind: input, shape index: {}]   ;;  %s2801_s2 = inlined_call_operand.vmem [shape: f32[1,128], index: 2, kind: input, shape index: {}]   ;;  %s2802_s3 = inlined_call_operand.hbm [shape: f32[2,288,128], index: 3, kind: output, shape index: {}]  }
   0x1   :  { %10 = vsyncpa [#allocation4 + $0x1], 0  ;;  %s2402_s12 = smov 0   ;;  %s2404_s13 = smov 0  }
   0x2   :  { %s2406_s14 = smov 0   ;;  %s2408_s15 = smov 0  }
   0x3   :  { %s2410_s16 = smov 0   ;;  %s2412_s17 = smov 0  }
   0x4 LB: > { %s1770_s18 = sadd.s32 4294967295, %s2377_s17   ;;  %s1771_s19 = sadd.s32 4294967294, %s2377_s17   ;;  %s2377_s17 = sphi %s2412_s17, %s16_s17   ;;  %s2373_s16 = sphi %s2410_s16, %s2809_s16   ;;  %s2369_s15 = sphi %s2408_s15, %s2808_s15   ;;  %s2365_s14 = sphi %s2406_s14, %s2807_s14   ;;  %s2361_s13 = sphi %s2404_s13, %s2806_s13   ;;  %s2357_s12 = sphi %s2402_s12, %s2805_s12  }
   0x5   : > { %s25_s20 = sadd.s32 1, %s2373_s16  ;;  %s115_s21 = sadd.s32 1, %s2365_s14 }
   0x6   : > { %p26_p0 = scmp.ge.s32.totalorder %s25_s20, 2  ;;  %p125_p1 = scmp.ne.s32.totalorder %s2365_s14, %s2361_s13 }
   0x7   : > { %p126_p2 = scmp.eq.s32.totalorder %s1770_s18, 1  ;;  %p131_p3 = scmp.ne.s32.totalorder %s2361_s13, %s2357_s12 }
   0x8   : > { %s2811_s20 = smov (%p26_p0, %s25_s20), 0  ;;  %p132_p5 = scmp.eq.s32.totalorder %s1771_s19, 1 }
   0x9   : > { %p2442_p4 = por %p126_p2, %p125_p1  ;;  %s110_s23 = ssub.s32 %s2373_s16, %s2811_s20 }
   0xa   : > { %p1776_p6 = scmp.ge.s32.totalorder %s2377_s17, 1  ;;  %p113_p7 = scmp.eq.s32.totalorder %s110_s23, 0 }
   0xb   : > { %p2449_p8 = por %p132_p5, %p131_p3  ;;  %p171_p9 = scmp.lt.s32.totalorder %s2377_s17, 3 }
   0xc   : > { %s2455_s25 = scalar_select %p113_p7, %s2365_s14, %s115_s21  }
   0xd   : > { %p172_p10 = pnand %p1776_p6, %p171_p9 }
   0xe   : > { %v2240_v0 = vld [vmem:[%s2800_s1] sm:$0xff] (!%p172_p10)   ;;  %p202_p11 = scmp.lt.s32.totalorder (!%p172_p10), %s2369_s15, 1  ;;  %v2241_v1 = vld [vmem:[%s2800_s1 + $0x8] sm:$0xff] (!%p172_p10)   ;;  %v2246_v2 = vld [vmem:[%s2800_s1 + $0x10] sm:$0xff] (!%p172_p10)   ;;  %vm356_vm0 = vcmask (!%p172_p10), 130048   ;;  %vm757_vm1 = vcmask (!%p172_p10), 1046528  }
   0xf   : > { %175 = sbr.rel (%p172_p10) target bundleno = 369 (0x171), region = 32  ;;  %1956 = vmatprep.subr.bf16.mxu1 (!%p172_p10), %v2240_v0  ;;  %1994 = vmatprep.subr.bf16.mxu0 (!%p172_p10), %v2241_v1  ;;  %vm1273_vm2 = vcmask (!%p172_p10), 1045504   ;;  %s199_s10 = sand.u32 (!%p172_p10), 1, %s2361_s13  }
  0x10   : > { %1957 = vmatpush3.bf16.msra.mxu1 (!%p172_p10), %v2240_v0  ;;  %1995 = vmatpush3.bf16.msra.mxu0 (!%p172_p10), %v2241_v1  ;;  %s2180_s19 = smul.u32 (!%p172_p10), 288, %s199_s10  ;;  %s2753_s29 = scalar_lea.sflag (!%p172_p10), [#allocation4], %s199_s10 }
  0x11   : > { %2070 = vmatprep.subr.bf16.mxu1 (!%p172_p10), %v2241_v1  ;;  %2032 = vmatprep.subr.bf16.mxu0 (!%p172_p10), %v2246_v2  ;;  %s2182_s23 = smul.u32 (!%p172_p10), 4608, %s2369_s15  ;;  %s2379_s4 = smov (!%p172_p10), [#allocation3]  }
  0x12   : > { %s2667_s21 = scalar_lea.vmem (!%p172_p10), [#allocation3], %s2180_s19  ;;  %s2303_s5 = sshll.u32 (!%p172_p10), %s2379_s4, 4  ;;  %s2304_s5 = int_to_ptr.vmem [resolvable:$false] %s2303_s5 }
  0x13   : > { %s1671_s26 = sshll.u32 (!%p172_p10), %s2667_s21, 4  ;;  %s2744_s28 = scalar_lea.hbm (!%p172_p10), %s2802_s3, %s2182_s23  ;;  %s2746_s26 = int_to_ptr.vmem [resolvable:$true] %s1671_s26 }
  0x14   : > { %p2306_p1 = scmp.lt.s32.totalorder (!%p172_p10), %s2746_s26, %s2304_s5 }
  0x16   : > { %s203_s30 = scalar_select %p202_p11, %s2369_s15, 1 }
  0x18   : > { %s2181_s6 = smul.u32 164, %s203_s30  ;;  %s2299_s30 = scalar_lea.vmem %s2746_s26, 4608 }
  0x19   : > { %p2300_p12 = scmp.ne.s32.totalorder %s2746_s26, %s2299_s30 }
  0x1a   : > { %s2471_s9 = scalar_lea.vmem %s2799_s0, %s2181_s6  ;;  %s2305_s6 = scalar_lea.vmem %s2304_s5, 9216 }
  0x1b   : > { %v2242_v3 = vld [vmem:[%s2471_s9] sm:$0xff]   ;;  %v2243_v4 = vld [vmem:[%s2471_s9 + $0x8] sm:$0xff]   ;;  %v2245_v6 = vld [vmem:[%s2471_s9 + $0x10] sm:$0xff]   ;;  %p2301_p13 = pnand %p2300_p12, %p2442_p4  ;;  %p2307_p2 = scmp.lt.s32.totalorder %s2305_s6, %s2299_s30 }
  0x1c   : > { %1958 = vmatprep.mubr.msk.bf16.mxu1 %vm356_vm0, %v2242_v3  ;;  %v2244_v5 = vld [vmem:[%s2471_s9 + $0x8] sm:$0xfe]   ;;  %v2247_v7 = vld [vmem:[%s2471_s9 + $0x18] sm:$0xff]   ;;  %v759_v9 = vrot.slane %v2245_v6, 1  ;;  %v2248_v11 = vld [vmem:[%s2471_s9 + $0x10] sm:$0xff]  }
  0x1d   : > { %1959 = vmatmul.mubr.msk.bf16.vlgmr.msra.gmra.mrb[0].mxu1 %vm356_vm0, %v2243_v4  ;;  %v758_v8 = vrot.slane %v2244_v5, 1  ;;  %v761_v10 = vrot.slane %v2247_v7, 1  ;;  %v2249_v13 = vld [vmem:[%s2471_s9 + $0x18] sm:$0xff]   ;;  %v2250_v15 = vld [vmem:[%s2471_s9 + $0x20] sm:$0xff]   ;;  %v2251_v16 = vld [vmem:[%s2471_s9 + $0x28] sm:$0xff]   ;;  %p2302_p0 = pneg %p2301_p13  ;;  %p2308_p3 = por %p2307_p2, %p2306_p1 }
  0x1e   : > { %2071 = vmatpush3.bf16.msra.mxu1 %v2241_v1  ;;  %1962 = vmatprep.mubr.msk.bf16.mxu1 %vm356_vm0, %v2248_v11  ;;  %v763_v17 = vrot.slane %v2250_v15, 1  ;;  %v2252_v18 = vld [vmem:[%s2471_s9 + $0x20] sm:$0xff]   ;;  %v765_v19 = vrot.slane %v2251_v16, 1  ;;  %v2254_v21 = vld [vmem:[%s2471_s9 + $0x30] sm:$0xff]   ;;  %v2253_v22 = vld [vmem:[%s2471_s9 + $0x28] sm:$0xff]  }
  0x1f   : > { %v760_v12 = vsel %vm757_vm1, %v758_v8, %v759_v9  ;;  %v762_v14 = vsel %vm757_vm1, %v759_v9, %v761_v10  ;;  %v767_v24 = vrot.slane %v2254_v21, 1  ;;  %v2255_v25 = vld [vmem:[%s2471_s9 + $0x38] sm:$0xff]   ;;  %v2256_v26 = vld [vmem:[%s2471_s9 + $0x30] sm:$0xff]   ;;  %v2258_v28 = vld [vmem:[%s2471_s9 + $0x40] sm:$0xff]   ;;  %p2309_p5 = pnand %p2308_p3, %p2302_p0 }
  0x20   : > { %1996 = vmatprep.mubr.msk.bf16.mxu0 %vm356_vm0, %v760_v12  ;;  %v764_v20 = vsel %vm757_vm1, %v761_v10, %v763_v17  ;;  %v766_v23 = vsel %vm757_vm1, %v763_v17, %v765_v19  ;;  %v769_v29 = vrot.slane %v2255_v25, 1  ;;  %v771_v30 = vrot.slane %v2258_v28, 1  ;;  %v2257_v31 = vld [vmem:[%s2471_s9 + $0x38] sm:$0xff]   ;;  %v2259_v33 = vld [vmem:[%s2471_s9 + $0x48] sm:$0xff]   ;;  %v2262_v35 = vld [vmem:[%s2471_s9 + $0x50] sm:$0xff]  }
  0x21   : > { %1997 = vmatmul.mubr.msk.bf16.vlgmr.msra.gmra.mrb[0].mxu0 %vm356_vm0, %v762_v14  ;;  %v768_v27 = vsel %vm757_vm1, %v765_v19, %v767_v24  ;;  %v2260_v36 = vld [vmem:[%s2471_s9 + $0x40] sm:$0xff]   ;;  %v773_v37 = vrot.slane %v2259_v33, 1  ;;  %v775_v38 = vrot.slane %v2262_v35, 1  ;;  %v2261_v39 = vld [vmem:[%s2471_s9 + $0x48] sm:$0xff]   ;;  %v2517_v40 = vld [vmem:[%s2471_s9 + $0x58] sm:$0xff]  }
  0x22   : > { %2033 = vmatpush3.bf16.msra.mxu0 %v2246_v2  ;;  %2000 = vmatprep.mubr.msk.bf16.mxu0 %vm356_vm0, %v764_v20  ;;  %v770_v32 = vsel %vm757_vm1, %v767_v24, %v769_v29  ;;  %v772_v34 = vsel %vm757_vm1, %v769_v29, %v771_v30  ;;  %v2266_v42 = vld [vmem:[%s2471_s9 + $0x10] sm:$0xfc]   ;;  %v2267_v44 = vld [vmem:[%s2471_s9 + $0x18] sm:$0xff]   ;;  %v777_v46 = vrot.slane %v2517_v40, 1  ;;  %v2268_v50 = vld [vmem:[%s2471_s9 + $0x20] sm:$0xff]  }
  0x23   : > { %v774_v41 = vsel %vm757_vm1, %v771_v30, %v773_v37  ;;  %v776_v43 = vsel %vm757_vm1, %v773_v37, %v775_v38  ;;  %v2264_v45 = vld [vmem:[%s2471_s9 + $0x50] sm:$0xff]   ;;  %v1274_v47 = vrot.slane %v2266_v42, 2  ;;  %v1275_v48 = vrot.slane %v2267_v44, 2  ;;  %v2265_v49 = vld [vmem:[%s2471_s9 + $0x58] sm:$0xff]   ;;  %v2269_v52 = vld [vmem:[%s2471_s9 + $0x60] sm:$0xff]  }
  0x24   : > { %v778_v51 = vsel %vm757_vm1, %v775_v38, %v777_v46  ;;  %v2271_v53 = vld [vmem:[%s2471_s9 + $0x28] sm:$0xff]   ;;  %v2538_v55 = vld [vmem:[%s2471_s9 + $0x60] sm:$0xff]   ;;  %v1277_v58 = vrot.slane %v2268_v50, 2  ;;  %v2285_v61 = vld [vmem:[%s2471_s9 + $0x70] sm:$0xff]  }
  0x25   : > { %1963 = vmatmul.mubr.msk.bf16.gmra.mrb[4].mxu1 %vm356_vm0, %v2249_v13  ;;  %v1276_v54 = vsel %vm1273_vm2, %v1274_v47, %v1275_v48  ;;  %v2282_v56 = vld [vmem:[%s2471_s9 + $0x68] sm:$0xff]   ;;  %v779_v57 = vrot.slane %v2538_v55, 1  ;;  %v1279_v60 = vrot.slane %v2271_v53, 2  ;;  %v2286_v63 = vld [vmem:[%s2471_s9 + $0x78] sm:$0xff]   ;;  %v2272_v1 = vld [vmem:[%s2471_s9 + $0x30] sm:$0xff]   ;;  %v783_v2 = vrot.slane %v2285_v61, 1 }
  0x26   : > { %1966 = vmatprep.mubr.msk.bf16.mxu1 %vm356_vm0, %v2252_v18  ;;  %v781_v59 = vrot.slane %v2282_v56, 1  ;;  %v2270_v0 = vld [vmem:[%s2471_s9 + $0x68] sm:$0xff]   ;;  %v1278_v3 = vsel %vm1273_vm2, %v1275_v48, %v1277_v58  ;;  %v2273_v4 = vld [vmem:[%s2471_s9 + $0x70] sm:$0xff]   ;;  %v2275_v5 = vld [vmem:[%s2471_s9 + $0x38] sm:$0xff]   ;;  %v785_v6 = vrot.slane %v2286_v63, 1  ;;  %v1281_v13 = vrot.slane %v2272_v1, 2 }
  0x27   : > { %v1280_v7 = vsel %vm1273_vm2, %v1277_v58, %v1279_v60  ;;  %v2289_v9 = vld [vmem:[%s2471_s9 + $0x80] sm:$0xff]   ;;  %v2290_v11 = vld [vmem:[%s2471_s9 + $0x88] sm:$0xff]   ;;  %v1283_v15 = vrot.slane %v2275_v5, 2  ;;  %v2293_v17 = vld [vmem:[%s2471_s9 + $0x90] sm:$0xff]   ;;  %v780_v47 = vsel %vm757_vm1, %v777_v46, %v779_v57 }
  0x28   : > { %v2550_v62 = vsel %vm757_vm1, %v779_v57, %v781_v59  ;;  %v784_v8 = vsel %vm757_vm1, %v781_v59, %v783_v2  ;;  %v2562_v10 = vsel %vm757_vm1, %v783_v2, %v785_v6  ;;  %v787_v12 = vrot.slane %v2289_v9, 1  ;;  %v2294_v19 = vld [vmem:[%s2471_s9 + $0x98] ss:$0 sps:$4 sm:$0x11]   ;;  %v2276_v21 = vld [vmem:[%s2471_s9 + $0x40] sm:$0xff]   ;;  %v2579_v25 = vld [vmem:[%s2471_s9 + $0x90] sm:$0xff]  }
  0x29   : > { %2001 = vmatmul.mubr.msk.bf16.gmra.mrb[4].mxu0 %vm356_vm0, %v766_v23  ;;  %v789_v14 = vrot.slane %v2290_v11, 1  ;;  %v2274_v20 = vld [vmem:[%s2471_s9 + $0x78] sm:$0xff]   ;;  %v1282_v23 = vsel %vm1273_vm2, %v1279_v60, %v1281_v13  ;;  %v793_v24 = vrot.slane %v2294_v19, 1  ;;  %v2277_v30 = vld [vmem:[%s2471_s9 + $0x80] sm:$0xff]   ;;  %v1305_v33 = vrot.slane %v2579_v25, 2  ;;  %v2280_v42 = vld [vmem:[%s2471_s9 + $0x50] sm:$0xff]  }
  0x2a   : > { %2004 = vmatprep.mubr.msk.bf16.mxu0 %vm356_vm0, %v768_v27  ;;  %v788_v16 = vsel %vm757_vm1, %v785_v6, %v787_v12  ;;  %v2279_v27 = vld [vmem:[%s2471_s9 + $0x48] sm:$0xff]   ;;  %v2297_v29 = vld [vmem:[%s2471_s9 + $0x98] sm:$0xff]   ;;  %v1285_v35 = vrot.slane %v2276_v21, 2  ;;  %v1289_v48 = vrot.slane %v2280_v42, 2  ;;  %v2288_v55 = vld [vmem:[%s2471_s9 + $0x70] sm:$0xff]  }
  0x2b   : > { %v2572_v18 = vsel %vm757_vm1, %v787_v12, %v789_v14  ;;  %v1287_v37 = vrot.slane %v2279_v27, 2  ;;  %v2287_v53 = vld [vmem:[%s2471_s9 + $0x68] sm:$0xff]   ;;  %v2291_v57 = vld [vmem:[%s2471_s9 + $0x78] sm:$0xff]   ;;  %v1297_v58 = vrot.slane %v2288_v55, 2  ;;  %v2292_v61 = vld [vmem:[%s2471_s9 + $0x80] sm:$0xff]  }
  0x2c   : > { %v1295_v46 = vrot.slane %v2287_v53, 2  ;;  %v1299_v59 = vrot.slane %v2291_v57, 2  ;;  %v2295_v63 = vld [vmem:[%s2471_s9 + $0x88] sm:$0xff]   ;;  %v2659_v25 = vld [vmem:[%s2801_s2] ss:$0 sm:$0xff] }
  0x2d   : > { %1967 = vmatmul.mubr.msk.bf16.gmra.mrb[8].mxu1 %vm356_vm0, %v2253_v22  ;;  %v791_v22 = vrot.slane %v2293_v17, 1  ;;  %v1288_v44 = vsel %vm1273_vm2, %v1285_v35, %v1287_v37  ;;  %v1290_v50 = vsel %vm1273_vm2, %v1287_v37, %v1289_v48  ;;  %v1303_v1 = vrot.slane %v2295_v63, 2 }
  0x2e   : > { %1970 = vmatprep.mubr.msk.bf16.mxu1 %vm356_vm0, %v2256_v26  ;;  %v1284_v26 = vsel %vm1273_vm2, %v1281_v13, %v1283_v15  ;;  %v1298_v60 = vsel %vm1273_vm2, %v1295_v46, %v1297_v58 }
  0x2f   : > { %v792_v28 = vsel %vm757_vm1, %v789_v14, %v791_v22 }
  0x31   : > { %2005 = vmatmul.mubr.msk.bf16.gmra.mrb[8].mxu0 %vm356_vm0, %v770_v32  ;;  %v2298_v32 = vld [vmem:[%s2471_s9 + $0xa0] ss:$0 sps:$4 sm:$0x33]  }
  0x32   : > { %2008 = vmatprep.mubr.msk.bf16.mxu0 %vm356_vm0, %v772_v34  ;;  %v1307_v34 = vrot.slane %v2297_v29, 2 }
  0x34   : > { %v1308_v38 = vsel %vm1273_vm2, %v1305_v33, %v1307_v34 }
  0x35   : > { %1971 = vmatmul.mubr.msk.bf16.gmra.mrb[12].mxu1 %vm356_vm0, %v2257_v31  ;;  %v794_v31 = vsel %vm757_vm1, %v791_v22, %v793_v24 }
  0x36   : > { %1974 = vmatprep.mubr.msk.bf16.mxu1 %vm356_vm0, %v2260_v36  ;;  %v1309_v36 = vrot.slane %v2298_v32, 2 }
  0x39   : > { %2009 = vmatmul.mubr.msk.bf16.gmra.mrb[12].mxu0 %vm356_vm0, %v774_v41  ;;  %v1286_v41 = vsel %vm1273_vm2, %v1283_v15, %v1285_v35 }
  0x3a   : > { %2012 = vmatprep.mubr.msk.bf16.mxu0 %vm356_vm0, %v776_v43  ;;  %v2278_v43 = vld [vmem:[%s2471_s9 + $0x88] sm:$0xff]  }
  0x3d   : > { %1975 = vmatmul.mubr.msk.bf16.gmra.mrb[16].mxu1 %vm356_vm0, %v2261_v39  ;;  %v1310_v39 = vsel %vm1273_vm2, %v1307_v34, %v1309_v36 }
  0x3e   : > { %1978 = vmatprep.mubr.msk.bf16.mxu1 %vm356_vm0, %v2264_v45  ;;  %v2283_v45 = vld [vmem:[%s2471_s9 + $0x58] sm:$0xff]  }
  0x41   : > { %2013 = vmatmul.mubr.msk.bf16.gmra.mrb[16].mxu0 %vm356_vm0, %v778_v51  ;;  %v2284_v51 = vld [vmem:[%s2471_s9 + $0x60] sm:$0xff]  }
  0x42   : > { %2034 = vmatprep.mubr.msk.bf16.mxu0 %vm356_vm0, %v1276_v54  ;;  %v1293_v40 = vrot.slane %v2284_v51, 2 }
  0x44   : > { %v1296_v56 = vsel %vm1273_vm2, %v1293_v40, %v1295_v46 }
  0x45   : > { %1979 = vmatmul.mubr.msk.bf16.gmra.mrb[20].mxu1 %vm356_vm0, %v2265_v49  ;;  %v1291_v49 = vrot.slane %v2283_v45, 2 }
  0x46   : > { %1982 = vmatprep.mubr.msk.bf16.mxu1 %vm356_vm0, %v2269_v52 }
  0x47   : > { %v1292_v52 = vsel %vm1273_vm2, %v1289_v48, %v1291_v49  ;;  %v1294_v54 = vsel %vm1273_vm2, %v1291_v49, %v1293_v40 }
  0x49   : > { %2035 = vmatmul.mubr.msk.bf16.vlgmr.msra.gmra.mrb[0].mxu0 %vm356_vm0, %v1278_v3 }
  0x4a   : > { %2038 = vmatprep.mubr.msk.bf16.mxu0 %vm356_vm0, %v1280_v7 }
  0x4d   : > { %1983 = vmatmul.mubr.msk.bf16.gmra.mrb[24].mxu1 %vm356_vm0, %v2270_v0  ;;  %v1301_v0 = vrot.slane %v2292_v61, 2 }
  0x4e   : > { %1986 = vmatprep.mubr.msk.bf16.mxu1 %vm356_vm0, %v2273_v4  ;;  %v1306_v4 = vsel %vm1273_vm2, %v1303_v1, %v1305_v33 }
  0x4f   : > { %v1302_v2 = vsel %vm1273_vm2, %v1299_v59, %v1301_v0  ;;  %v1304_v3 = vsel %vm1273_vm2, %v1301_v0, %v1303_v1 }
  0x51   : > { %2039 = vmatmul.mubr.msk.bf16.gmra.mrb[4].mxu0 %vm356_vm0, %v1282_v23 }
  0x52   : > { %2042 = vmatprep.mubr.msk.bf16.mxu0 %vm356_vm0, %v1284_v26 }
  0x55   : > { %1987 = vmatmul.mubr.msk.bf16.gmra.mrb[28].mxu1 %vm356_vm0, %v2274_v20 }
  0x56   : > { %1990 = vmatprep.mubr.msk.bf16.mxu1 %vm356_vm0, %v2277_v30 }
  0x59   : > { %2043 = vmatmul.mubr.msk.bf16.gmra.mrb[8].mxu0 %vm356_vm0, %v1286_v41 }
  0x5a   : > { %2046 = vmatprep.mubr.msk.bf16.mxu0 %vm356_vm0, %v1288_v44 }
  0x5d   : > { %1991 = vmatmul.mubr.msk.bf16.gmra.mrb[32].mxu1 %vm356_vm0, %v2278_v43 }
  0x5e   : > { %2016 = vmatprep.mubr.msk.bf16.mxu1 %vm356_vm0, %v780_v47 }
  0x61   : > { %2047 = vmatmul.mubr.msk.bf16.gmra.mrb[12].mxu0 %vm356_vm0, %v1290_v50 }
  0x62   : > { %2050 = vmatprep.mubr.msk.bf16.mxu0 %vm356_vm0, %v1292_v52 }
  0x65   : > { %2017 = vmatmul.mubr.msk.bf16.vlgmr.msra.gmra.mrb[20].mxu1 %vm356_vm0, %v2550_v62  ;;  %v1300_v62 = vsel %vm1273_vm2, %v1297_v58, %v1299_v59 }
  0x66   : > { %2020 = vmatprep.mubr.msk.bf16.mxu1 %vm356_vm0, %v784_v8 }
  0x69   : > { %2051 = vmatmul.mubr.msk.bf16.gmra.mrb[16].mxu0 %vm356_vm0, %v1294_v54 }
  0x6a   : > { %2054 = vmatprep.mubr.msk.bf16.mxu0 %vm356_vm0, %v1296_v56 }
  0x6d   : > { %2021 = vmatmul.mubr.msk.bf16.gmra.mrb[24].mxu1 %vm356_vm0, %v2562_v10 }
  0x6e   : > { %2024 = vmatprep.mubr.msk.bf16.mxu1 %vm356_vm0, %v788_v16 }
  0x71   : > { %2055 = vmatmul.mubr.msk.bf16.gmra.mrb[20].mxu0 %vm356_vm0, %v1298_v60 }
  0x72   : > { %2058 = vmatprep.mubr.msk.bf16.mxu0 %vm356_vm0, %v1300_v62 }
  0x75   : > { %2025 = vmatmul.mubr.msk.bf16.gmra.mrb[28].mxu1 %vm356_vm0, %v2572_v18 }
  0x76   : > { %2028 = vmatprep.mubr.msk.bf16.mxu1 %vm356_vm0, %v792_v28 }
  0x79   : > { %2059 = vmatmul.mubr.msk.bf16.gmra.mrb[24].mxu0 %vm356_vm0, %v1302_v2 }
  0x7a   : > { %2062 = vmatprep.mubr.msk.bf16.mxu0 %vm356_vm0, %v1304_v3 }
  0x7d   : > { %2029 = vmatmul.mubr.msk.bf16.gmra.mrb[32].mxu1 %vm356_vm0, %v794_v31 }
  0x81   : > { %2063 = vmatmul.mubr.msk.bf16.gmra.mrb[28].mxu0 %vm356_vm0, %v1306_v4 }
  0x82   : > { %2066 = vmatprep.mubr.msk.bf16.mxu0 %vm356_vm0, %v1308_v38 }
  0x89   : > { %2067 = vmatmul.mubr.msk.bf16.gmra.mrb[32].mxu0 %vm356_vm0, %v1310_v39 }
  0xf0   : > { %v1960_v5 = vpop.f32.mrb[0].mxu1 }
  0xf1   : > { %v445_v6 = vpop.f32.mrb[1].mxu1  ;;  %v454_v26 = vadd.f32 %v1960_v5, %v2659_v25 }
  0xf2   : > { %v1961_v7 = vpop.f32.mrb[2].mxu1  ;;  %v446_v27 = vadd.f32 %v2659_v25, %v445_v6 }
  0xf3   : > { %v448_v8 = vpop.f32.mrb[3].mxu1  ;;  %v457_v29 = vadd.f32 %v1961_v7, %v2659_v25 }
  0xf4   : > { %v449_v32 = vadd.f32 %v2659_v25, %v448_v8 }
  0xf8   : > { %v1964_v9 = vpop.f32.mrb[4].mxu1 }
  0xf9   : > { %v461_v10 = vpop.f32.mrb[5].mxu1  ;;  %v470_v38 = vadd.f32 %v1964_v9, %v2659_v25 }
  0xfa   : > { %v1965_v11 = vpop.f32.mrb[6].mxu1  ;;  %v462_v39 = vadd.f32 %v2659_v25, %v461_v10 }
  0xfb   : > { %v464_v12 = vpop.f32.mrb[7].mxu1  ;;  %v473_v42 = vadd.f32 %v1965_v11, %v2659_v25 }
  0xfc   : > { %v465_v45 = vadd.f32 %v2659_v25, %v464_v12 }
 0x100   : > { %v1968_v13 = vpop.f32.mrb[8].mxu1 }
 0x101   : > { %v477_v14 = vpop.f32.mrb[9].mxu1  ;;  %v486_v52 = vadd.f32 %v1968_v13, %v2659_v25 }
 0x102   : > { %v1969_v15 = vpop.f32.mrb[10].mxu1  ;;  %v478_v53 = vadd.f32 %v2659_v25, %v477_v14 }
 0x103   : > { %v480_v16 = vpop.f32.mrb[11].mxu1  ;;  %v489_v46 = vadd.f32 %v1969_v15, %v2659_v25 }
 0x104   : > { %v481_v56 = vadd.f32 %v2659_v25, %v480_v16 }
 0x108   : > { %v1972_v17 = vpop.f32.mrb[12].mxu1 }
 0x109   : > { %v493_v18 = vpop.f32.mrb[13].mxu1  ;;  %v502_v62 = vadd.f32 %v1972_v17, %v2659_v25 }
 0x10a   : > { %v1973_v19 = vpop.f32.mrb[14].mxu1  ;;  %v494_v63 = vadd.f32 %v2659_v25, %v493_v18 }
 0x10b   : > { %v2645_v20 = vpop.f32.mrb[15].mxu1  ;;  %v505_v1 = vadd.f32 %v1973_v19, %v2659_v25 }
 0x10c   : > { %v497_v4 = vadd.f32 %v2659_v25, %v2645_v20 }
 0x110   : > { %v2647_v21 = vpop.f32.mrb[16].mxu1 }
 0x111   : > { %v2649_v22 = vpop.f32.mrb[17].mxu1  ;;  %v518_v14 = vadd.f32 %v2647_v21, %v2659_v25 }
 0x112   : > { %v2651_v23 = vpop.f32.mrb[18].mxu1  ;;  %v510_v15 = vadd.f32 %v2659_v25, %v2649_v22 }
 0x113   : > { %v2653_v24 = vpop.f32.mrb[19].mxu1  ;;  %v521_v17 = vadd.f32 %v2651_v23, %v2659_v25 }
 0x114   : > { %v513_v20 = vadd.f32 %v2659_v25, %v2653_v24 }
 0x11c   : > { %v2036_v28 = vpop.f32.mrb[0].mxu0 }
 0x11d   : > { %v2073_v30 = vadd.f32 %v2036_v28, %v454_v26  ;;  %v1405_v31 = vpop.f32.mrb[1].mxu0 }
 0x11e   : > { %v2075_v33 = vadd.f32 %v1405_v31, %v446_v27  ;;  %v2037_v34 = vpop.f32.mrb[2].mxu0 }
 0x11f   : > { %1622 = vst [vmem:[%s2667_s21 + $0x10] sm:$0xff] %v2073_v30  ;;  %v2077_v35 = vadd.f32 %v2037_v34, %v457_v29  ;;  %v1408_v36 = vpop.f32.mrb[3].mxu0 }
 0x120   : > { %1620 = vst [vmem:[%s2667_s21] sm:$0xff] %v2075_v33  ;;  %v2079_v37 = vadd.f32 %v1408_v36, %v449_v32 }
 0x121   : > { %1623 = vst [vmem:[%s2667_s21 + $0x18] sm:$0xff] %v2077_v35 }
 0x122   : > { %1621 = vst [vmem:[%s2667_s21 + $0x8] sm:$0xff] %v2079_v37 }
 0x124   : > { %v2040_v41 = vpop.f32.mrb[4].mxu0 }
 0x125   : > { %v2081_v43 = vadd.f32 %v2040_v41, %v470_v38  ;;  %v1421_v44 = vpop.f32.mrb[5].mxu0 }
 0x126   : > { %v2083_v47 = vadd.f32 %v1421_v44, %v462_v39  ;;  %v2041_v48 = vpop.f32.mrb[6].mxu0 }
 0x127   : > { %1626 = vst [vmem:[%s2667_s21 + $0x30] sm:$0xff] %v2081_v43  ;;  %v2085_v49 = vadd.f32 %v2041_v48, %v473_v42  ;;  %v1424_v50 = vpop.f32.mrb[7].mxu0 }
 0x128   : > { %1624 = vst [vmem:[%s2667_s21 + $0x20] sm:$0xff] %v2083_v47  ;;  %v2087_v51 = vadd.f32 %v1424_v50, %v465_v45 }
 0x129   : > { %1627 = vst [vmem:[%s2667_s21 + $0x38] sm:$0xff] %v2085_v49 }
 0x12a   : > { %1625 = vst [vmem:[%s2667_s21 + $0x28] sm:$0xff] %v2087_v51 }
 0x12c   : > { %v2044_v40 = vpop.f32.mrb[8].mxu0 }
 0x12d   : > { %v2089_v54 = vadd.f32 %v2044_v40, %v486_v52  ;;  %v1437_v55 = vpop.f32.mrb[9].mxu0 }
 0x12e   : > { %v2091_v57 = vadd.f32 %v1437_v55, %v478_v53  ;;  %v2045_v58 = vpop.f32.mrb[10].mxu0 }
 0x12f   : > { %1630 = vst [vmem:[%s2667_s21 + $0x50] sm:$0xff] %v2089_v54  ;;  %v2093_v59 = vadd.f32 %v2045_v58, %v489_v46  ;;  %v1440_v60 = vpop.f32.mrb[11].mxu0 }
 0x130   : > { %1628 = vst [vmem:[%s2667_s21 + $0x40] sm:$0xff] %v2091_v57  ;;  %v2095_v61 = vadd.f32 %v1440_v60, %v481_v56 }
 0x131   : > { %1631 = vst [vmem:[%s2667_s21 + $0x58] sm:$0xff] %v2093_v59 }
 0x132   : > { %1629 = vst [vmem:[%s2667_s21 + $0x48] sm:$0xff] %v2095_v61 }
 0x134   : > { %v2048_v0 = vpop.f32.mrb[12].mxu0 }
 0x135   : > { %v2097_v2 = vadd.f32 %v2048_v0, %v502_v62  ;;  %v1453_v3 = vpop.f32.mrb[13].mxu0 }
 0x136   : > { %v2099_v5 = vadd.f32 %v1453_v3, %v494_v63  ;;  %v2049_v6 = vpop.f32.mrb[14].mxu0 }
 0x137   : > { %1634 = vst [vmem:[%s2667_s21 + $0x70] sm:$0xff] %v2097_v2  ;;  %v2101_v8 = vadd.f32 %v2049_v6, %v505_v1  ;;  %v1456_v9 = vpop.f32.mrb[15].mxu0 }
 0x138   : > { %v2018_v7 = vpop.f32.mrb[20].mxu1  ;;  %1632 = vst [vmem:[%s2667_s21 + $0x60] sm:$0xff] %v2099_v5  ;;  %v2103_v11 = vadd.f32 %v1456_v9, %v497_v4 }
 0x139   : > { %v969_v10 = vpop.f32.mrb[21].mxu1  ;;  %1635 = vst [vmem:[%s2667_s21 + $0x78] sm:$0xff] %v2101_v8  ;;  %v2112_v23 = vadd.f32 %v2018_v7, %v2659_v25 }
 0x13a   : > { %v2019_v12 = vpop.f32.mrb[22].mxu1  ;;  %1633 = vst [vmem:[%s2667_s21 + $0x68] sm:$0xff] %v2103_v11  ;;  %v2114_v33 = vadd.f32 %v2659_v25, %v969_v10 }
 0x13b   : > { %v972_v13 = vpop.f32.mrb[23].mxu1  ;;  %v2116_v34 = vadd.f32 %v2019_v12, %v2659_v25 }
 0x13c   : > { %v2052_v16 = vpop.f32.mrb[16].mxu0  ;;  %v2118_v37 = vadd.f32 %v2659_v25, %v972_v13 }
 0x13d   : > { %v2105_v18 = vadd.f32 %v2052_v16, %v518_v14  ;;  %v1469_v19 = vpop.f32.mrb[17].mxu0 }
 0x13e   : > { %v2107_v26 = vadd.f32 %v1469_v19, %v510_v15  ;;  %v2053_v27 = vpop.f32.mrb[18].mxu0 }
 0x13f   : > { %1638 = vst [vmem:[%s2667_s21 + $0x90] sm:$0xff] %v2105_v18  ;;  %v2109_v29 = vadd.f32 %v2053_v27, %v521_v17  ;;  %v1472_v21 = vpop.f32.mrb[19].mxu0 }
 0x140   : > { %v2022_v28 = vpop.f32.mrb[24].mxu1  ;;  %1636 = vst [vmem:[%s2667_s21 + $0x80] sm:$0xff] %v2107_v26  ;;  %v2111_v22 = vadd.f32 %v1472_v21, %v513_v20 }
 0x141   : > { %v985_v30 = vpop.f32.mrb[25].mxu1  ;;  %1639 = vst [vmem:[%s2667_s21 + $0x98] sm:$0xff] %v2109_v29  ;;  %v2120_v49 = vadd.f32 %v2022_v28, %v2659_v25 }
 0x142   : > { %v2023_v31 = vpop.f32.mrb[26].mxu1  ;;  %1637 = vst [vmem:[%s2667_s21 + $0x88] sm:$0xff] %v2111_v22  ;;  %v2122_v50 = vadd.f32 %v2659_v25, %v985_v30 }
 0x143   : > { %v988_v32 = vpop.f32.mrb[27].mxu1  ;;  %v2124_v52 = vadd.f32 %v2023_v31, %v2659_v25 }
 0x144   : > { %v2056_v24 = vpop.f32.mrb[20].mxu0  ;;  %v2126_v46 = vadd.f32 %v2659_v25, %v988_v32 }
 0x145   : > { %v2113_v35 = vadd.f32 %v2112_v23, %v2056_v24  ;;  %v1485_v36 = vpop.f32.mrb[21].mxu0 }
 0x146   : > { %v2115_v38 = vadd.f32 %v2114_v33, %v1485_v36  ;;  %v2057_v39 = vpop.f32.mrb[22].mxu0 }
 0x147   : > { %1642 = vst [vmem:[%s2667_s21 + $0xb0] sm:$0xff] %v2113_v35  ;;  %v2117_v42 = vadd.f32 %v2116_v34, %v2057_v39  ;;  %v1488_v43 = vpop.f32.mrb[23].mxu0 }
 0x148   : > { %v2026_v41 = vpop.f32.mrb[28].mxu1  ;;  %1640 = vst [vmem:[%s2667_s21 + $0xa0] sm:$0xff] %v2115_v38  ;;  %v2119_v45 = vadd.f32 %v2118_v37, %v1488_v43 }
 0x149   : > { %v1001_v44 = vpop.f32.mrb[29].mxu1  ;;  %1643 = vst [vmem:[%s2667_s21 + $0xb8] sm:$0xff] %v2117_v42  ;;  %v2128_v63 = vadd.f32 %v2026_v41, %v2659_v25 }
 0x14a   : > { %v2027_v47 = vpop.f32.mrb[30].mxu1  ;;  %1641 = vst [vmem:[%s2667_s21 + $0xa8] sm:$0xff] %v2119_v45  ;;  %v2130_v0 = vadd.f32 %v2659_v25, %v1001_v44 }
 0x14b   : > { %v1004_v48 = vpop.f32.mrb[31].mxu1  ;;  %v2132_v2 = vadd.f32 %v2027_v47, %v2659_v25 }
 0x14c   : > { %v2060_v51 = vpop.f32.mrb[24].mxu0  ;;  %v2134_v5 = vadd.f32 %v2659_v25, %v1004_v48 }
 0x14d   : > { %v2121_v53 = vadd.f32 %v2120_v49, %v2060_v51  ;;  %v1501_v40 = vpop.f32.mrb[25].mxu0 }
 0x14e   : > { %v2123_v54 = vadd.f32 %v2122_v50, %v1501_v40  ;;  %v2061_v55 = vpop.f32.mrb[26].mxu0 }
 0x14f   : > { %1646 = vst [vmem:[%s2667_s21 + $0xd0] sm:$0xff] %v2121_v53  ;;  %v2125_v57 = vadd.f32 %v2124_v52, %v2061_v55  ;;  %v1504_v58 = vpop.f32.mrb[27].mxu0 }
 0x150   : > { %v2030_v56 = vpop.f32.mrb[32].mxu1  ;;  %1644 = vst [vmem:[%s2667_s21 + $0xc0] sm:$0xff] %v2123_v54  ;;  %v2127_v60 = vadd.f32 %v2126_v46, %v1504_v58 }
 0x151   : > { %v1017_v59 = vpop.f32.mrb[33].mxu1  ;;  %1647 = vst [vmem:[%s2667_s21 + $0xd8] sm:$0xff] %v2125_v57  ;;  %v2136_v11 = vadd.f32 %v2030_v56, %v2659_v25 }
 0x152   : > { %v2031_v61 = vpop.f32.mrb[34].mxu1  ;;  %1645 = vst [vmem:[%s2667_s21 + $0xc8] sm:$0xff] %v2127_v60  ;;  %v2138_v12 = vadd.f32 %v2659_v25, %v1017_v59 }
 0x153   : > { %v1020_v62 = vpop.f32.mrb[35].mxu1  ;;  %v2140_v14 = vadd.f32 %v2031_v61, %v2659_v25 }
 0x154   : > { %v2064_v1 = vpop.f32.mrb[28].mxu0  ;;  %v2142_v17 = vadd.f32 %v2659_v25, %v1020_v62 }
 0x155   : > { %v2129_v3 = vadd.f32 %v2128_v63, %v2064_v1  ;;  %v1517_v4 = vpop.f32.mrb[29].mxu0 }
 0x156   : > { %v2131_v6 = vadd.f32 %v2130_v0, %v1517_v4  ;;  %v2065_v7 = vpop.f32.mrb[30].mxu0 }
 0x157   : > { %1650 = vst [vmem:[%s2667_s21 + $0xf0] sm:$0xff] %v2129_v3  ;;  %v2133_v8 = vadd.f32 %v2132_v2, %v2065_v7  ;;  %v1520_v9 = vpop.f32.mrb[31].mxu0 }
 0x158   : > { %1648 = vst [vmem:[%s2667_s21 + $0xe0] sm:$0xff] %v2131_v6  ;;  %v2135_v10 = vadd.f32 %v2134_v5, %v1520_v9 }
 0x159   : > { %1651 = vst [vmem:[%s2667_s21 + $0xf8] sm:$0xff] %v2133_v8 }
 0x15a   : > { %1649 = vst [vmem:[%s2667_s21 + $0xe8] sm:$0xff] %v2135_v10 }
 0x15c   : > { %v2068_v13 = vpop.f32.mrb[32].mxu0 }
 0x15d   : > { %v2137_v15 = vadd.f32 %v2136_v11, %v2068_v13  ;;  %v1533_v16 = vpop.f32.mrb[33].mxu0 }
 0x15e   : > { %v2139_v18 = vadd.f32 %v2138_v12, %v1533_v16  ;;  %v2069_v19 = vpop.f32.mrb[34].mxu0 }
 0x15f   : > { %1654 = vst [vmem:[%s2667_s21 + $0x110] sm:$0xff] %v2137_v15  ;;  %v2141_v20 = vadd.f32 %v2140_v14, %v2069_v19  ;;  %v1536_v26 = vpop.f32.mrb[35].mxu0 }
 0x160   : > { %1652 = vst [vmem:[%s2667_s21 + $0x100] sm:$0xff] %v2139_v18  ;;  %v2143_v27 = vadd.f32 %v2142_v17, %v1536_v26 }
 0x161   : > { %1655 = vst [vmem:[%s2667_s21 + $0x118] sm:$0xff] %v2141_v20 }
 0x162   : > { %1653 = vst [vmem:[%s2667_s21 + $0x108] sm:$0xff] %v2143_v27 }
 0x163   : > { %2312 = shalt.err (!%p2309_p5)
}
 0x164   : > { %s2313_s7 = scalar_lea.hbm %s2744_s28, 4608  ;;  %s2317_s10 = scalar_lea.hbm %s2802_s3, 9216 }
 0x165   : > { %p2314_p6 = scmp.ne.s32.totalorder %s2744_s28, %s2313_s7  ;;  %p2318_p10 = scmp.lt.u32.totalorder %s2744_s28, %s2802_s3 }
 0x166   : > { %p2319_p11 = scmp.lt.u32.totalorder %s2317_s10, %s2313_s7  ;;  %p2321_p13 = scmp.lt.u32.totalorder %s2313_s7, %s2744_s28 }
 0x167   : > { %p2315_p7 = pnand %p2314_p6, %p2442_p4 }
 0x168   : > { %p2320_p12 = por %p2319_p11, %p2318_p10 }
 0x169   : > { %p2316_p9 = pneg %p2315_p7 }
 0x16a   : > { %p2322_p0 = por %p2321_p13, %p2320_p12 }
 0x16c   : > { %p2323_p1 = pnand %p2322_p0, %p2316_p9 }
 0x16e   : > { %2326 = shalt.err (!%p2323_p1)
}
 0x16f   : > { %s2380_s19 = smov 128   ;;  %s2381_s21 = smov 8  }
 0x170   : > { %2183 = dma.vmem_to_hbm [thread:$0]  (%p2442_p4), %s2746_s26, 4608, %s2744_s28, %s2753_s29, %s2380_s19, %s2380_s19, %s2381_s21  }
 0x171 PF: > { %p2189_p2 = scmp.ge.s32.totalorder %s2377_s17, 2  ;;  %s1686_s23 = sand.u32 1, %s2357_s12  }
 0x172   : > { %s1687_s15 = scalar_lea.sflag [#allocation4], %s1686_s23 }
 0x173   : > { %p2186_p3 = pnand %p2189_p2, %p2449_p8 }
 0x175   : > { %2352 = dma.done.wait (!%p2186_p3), %s1687_s15, 4608  }
 0x176   : > { %2354 = vsyncadd (!%p2186_p3), %s1687_s15, 4294962688  ;;  %s16_s17 = sadd.s32 1, %s2377_s17   ;;  %s2805_s12 = smov %s2361_s13 }
 0x177   : > { %p13_p5 = scmp.ge.s32.totalorder %s16_s17, 4   ;;  %s2806_s13 = smov %s2365_s14 }
 0x178   : > { %s2807_s14 = smov %s2455_s25  ;;  %s2808_s15 = smov %s2373_s16 }
 0x179   : > { %s2809_s16 = smov %s2811_s20  ;;  %15 = sbr.rel (!%p13_p5) target bundleno = 4 (0x4), region = 75 }
 0x180   :  { %1692 = vsyncpa [#allocation4], 1 }
 0x181   :  { %1694 = vsyncpa [#allocation4 + $0x1], 1 }

</bundles_post_ra>
